<compile_context>
chip_gen: v6e
topology: v6e:2x2x1
jax: 0.10.0
libtpu: 0.0.40
codegen_flags: <defaults>
</compile_context>

<pallas_src>
import functools

import jax
import jax.numpy as jnp
from jax.experimental import pallas as pl
from jax.experimental.pallas import tpu as pltpu


def _round_up(x, m):
    return (x + m - 1) // m * m


def _choose_tm(M, align):
    """Largest aligned row-tile that divides M exactly and yields >= 2 grid
    blocks (keeps both v7x TensorCores busy). Falls back to a single full-M
    block for small M; returns None if M is not even sublane-aligned."""
    for cand in (1024, 512, 256, 128, 64, 32, 16, 8):
        if cand % align == 0 and M % cand == 0 and M // cand >= 2:
            return cand
    if M % align == 0 and M <= 1024:
        return M
    return None


def _residual_linear_kernel(x_ref, w_ref, b_ref, o_ref, *,
                            module_factor: float, input_factor: float,
                            matmul_dtype):
    """out[i] = (x[i] @ W) * mf + b * mf + x[i] * if  for one row tile."""
    x = x_ref[...]                                      # (tm, H) row panel
    if matmul_dtype is not None and x.dtype != matmul_dtype:
        xm = x.astype(matmul_dtype)                     # one cast per row tile
    else:
        xm = x
    # W is VMEM-resident (constant block) and already in matmul dtype.
    y = jnp.dot(xm, w_ref[...], preferred_element_type=jnp.float32)   # MXU
    y = y + b_ref[...].astype(jnp.float32)              # (1, H) bias, resident
    out = y * module_factor + x.astype(jnp.float32) * input_factor
    o_ref[...] = out.astype(o_ref.dtype)


def residual_connection(x, w, b, *, module_factor=1.0, input_factor=1.0,
                        tm=None, matmul_dtype=jnp.bfloat16):
    """Pallas ResidualConnection(Linear(H, H)).

    Args:
      x: (batch, seq, hidden) activations.
      w: (hidden, hidden) weight laid out as in x out (PyTorch weight.T).
      b: (hidden,) bias.
      tm: optional row tile size (sweepable).
      matmul_dtype: dtype for the MXU operands (default bf16: halves W/x MXU
        bytes on all generations; pass None for exact f32 matmul).
    Returns:
      (batch, seq, hidden): linear(x) * module_factor + x * input_factor.
    """
    B, S, H = x.shape
    M = B * S
    x2d = x.reshape(M, H)

    # Pre-cast the weight ONCE in the wrapper (halves W HBM traffic, removes
    # the per-step in-kernel weight cast).  Bias / residual stay f32.
    w_mm = w if matmul_dtype is None else w.astype(matmul_dtype)
    b2d = b.reshape(1, H)

    itemsize_x = jnp.dtype(x.dtype).itemsize
    itemsize_w = jnp.dtype(w_mm.dtype).itemsize
    align = {4: 8, 2: 16, 1: 32}.get(itemsize_x, 8)     # sublane packing

    VMEM_BUDGET = 48 * 1024 * 1024      # headroom under v7x's 64 MiB physical

    def vmem_need(tile_m):
        return int(
            2 * tile_m * H * itemsize_x        # double-buffered x row panel
            + 2 * tile_m * H * itemsize_x      # double-buffered output tile
            + 2 * H * H * itemsize_w           # resident weight (conservative 2x)
            + 2 * H * 4                        # resident bias
            + tile_m * H * 4                   # f32 matmul / accum intermediate
            + tile_m * H * itemsize_w)         # in-kernel x cast for the MXU

    # ---- row-tile selection: prefer no padding, keep within VMEM budget ----
    if tm is None:
        tm = _choose_tm(M, align)
    if tm is None:
        # Rare fallback (M has no aligned divisor): pad rows (one extra pass).
        tm = min(128, _round_up(M, align))
    while tm >= 2 * align and vmem_need(tm) > VMEM_BUDGET:
        tm = _round_up(tm // 2, align)
    # TODO(synk): very large H (f32 weight >= ~24 MiB) would also want K/N
    # grid axes with a VMEM f32 accumulator; not needed for Conformer sizes.

    Mp = _round_up(M, tm)
    if Mp != M:
        x2d = jnp.pad(x2d, ((0, Mp - M), (0, 0)))
    nm = Mp // tm

    # ---- scheduler hints ----------------------------------------------------
    cost = pl.CostEstimate(
        flops=2 * Mp * H * H,
        transcendentals=0,
        bytes_accessed=itemsize_x * 2 * Mp * H + itemsize_w * H * H + 4 * H,
    )
    vmem_limit = int(min(VMEM_BUDGET,
                         max(32 * 1024 * 1024, int(vmem_need(tm) * 1.25))))

    kernel = functools.partial(
        _residual_linear_kernel,
        module_factor=float(module_factor),
        input_factor=float(input_factor),
        matmul_dtype=matmul_dtype,
    )

    out2d = pl.pallas_call(
        kernel,
        out_shape=jax.ShapeDtypeStruct((Mp, H), x.dtype),
        grid_spec=pltpu.PrefetchScalarGridSpec(
            num_scalar_prefetch=0,
            grid=(nm,),
            in_specs=[
                # x row panel, full H: changes per grid step
                pl.BlockSpec((tm, H), lambda i: (i, 0)),
                # full weight, constant block index -> fetched once, resident
                pl.BlockSpec((H, H), lambda i: (0, 0)),
                # full bias, constant block index -> fetched once, resident
                pl.BlockSpec((1, H), lambda i: (0, 0)),
            ],
            out_specs=pl.BlockSpec((tm, H), lambda i: (i, 0)),
        ),
        compiler_params=pltpu.CompilerParams(
            dimension_semantics=("parallel",),
            vmem_limit_bytes=vmem_limit,
        ),
        cost_estimate=cost,
    )(x2d, w_mm, b2d)

    if Mp != M:
        out2d = out2d[:M]
    return out2d.reshape(B, S, H)


if __name__ == "__main__":
    key = jax.random.PRNGKey(0)
    kx, kw, kb = jax.random.split(key, 3)

    batch, seq, hidden = 2, 8, 32
    module_factor, input_factor = 0.5, 1.0   # conformer half-step FFN residual

    x = jax.random.normal(kx, (batch, seq, hidden), dtype=jnp.float32)
    # Deterministic parameter init for the wrapped Linear(hidden, hidden).
    w = jax.random.normal(kw, (hidden, hidden), dtype=jnp.float32) * 0.02
    b = jax.random.normal(kb, (hidden,), dtype=jnp.float32) * 0.02

    # Reference (plain JAX, f32).
    ref = (jnp.einsum("bsh,hk->bsk", x, w) + b) * module_factor + x * input_factor

    # Exact f32 MXU path: tight tolerance.
    out_f32 = residual_connection(x, w, b,
                                  module_factor=module_factor,
                                  input_factor=input_factor,
                                  matmul_dtype=None)
    out_f32 = jax.block_until_ready(out_f32)
    assert out_f32.shape == x.shape
    assert jnp.allclose(out_f32, ref, atol=1e-5, rtol=1e-5)

    # Default bf16-operand MXU path (half the weight/x MXU bytes): bf16
    # operand rounding => looser tolerance expected.
    out_bf16 = residual_connection(x, w, b,
                                   module_factor=module_factor,
                                   input_factor=input_factor)
    out_bf16 = jax.block_until_ready(out_bf16)
    assert out_bf16.shape == x.shape
    assert jnp.allclose(out_bf16, ref, atol=1e-2, rtol=1e-2)

    print("KERNEL_OK")
</pallas_src>

<mosaic_0001>
module attributes {stable_mosaic.version = 11 : i64} {
  func.func @_residual_linear_kernel(%arg0: i32, %arg1: memref<8x32xf32, #tpu.memory_space<vmem>>, %arg2: memref<32x32xf32, #tpu.memory_space<vmem>>, %arg3: memref<1x32xf32, #tpu.memory_space<vmem>>, %arg4: memref<8x32xf32, #tpu.memory_space<vmem>>) attributes {dimension_semantics = [#tpu.dimension_semantics<parallel>], iteration_bounds = array<i64: 2>, scalar_prefetch = 0 : i64, scratch_operands = 0 : i64, tpu.core_type = #tpu.core_type<tc>, window_params = [{transform_indices = @transform_0, window_bounds = array<i64: 8, 32>}, {pipeline_mode = #tpu.pipeline_mode<synchronous>, transform_indices = @transform_1, window_bounds = array<i64: 32, 32>}, {pipeline_mode = #tpu.pipeline_mode<synchronous>, transform_indices = @transform_2, window_bounds = array<i64: 1, 32>}, {transform_indices = @transform_3, window_bounds = array<i64: 8, 32>}]} {
    %c0 = arith.constant 0 : index
    %c0_0 = arith.constant 0 : index
    %0 = vector.load %arg1[%c0, %c0_0] : memref<8x32xf32, #tpu.memory_space<vmem>>, vector<8x32xf32>
    %c0_1 = arith.constant 0 : index
    %c0_2 = arith.constant 0 : index
    %1 = vector.load %arg2[%c0_1, %c0_2] : memref<32x32xf32, #tpu.memory_space<vmem>>, vector<32x32xf32>
    %cst = arith.constant dense<0.000000e+00> : vector<8x32xf32>
    %2 = tpu.matmul %0, %1, %cst {dimension_numbers = #tpu.dot_dimension_numbers<[1], [0], [0], [1], [0, 0, 1, 1], [], []>} : vector<8x32xf32>, vector<32x32xf32>, vector<8x32xf32> -> vector<8x32xf32>
    %c0_3 = arith.constant 0 : index
    %c0_4 = arith.constant 0 : index
    %3 = vector.load %arg3[%c0_3, %c0_4] : memref<1x32xf32, #tpu.memory_space<vmem>>, vector<1x32xf32>
    %4 = vector.broadcast %3 : vector<1x32xf32> to vector<8x32xf32>
    %5 = arith.addf %2, %4 : vector<8x32xf32>
    %cst_5 = arith.constant 5.000000e-01 : f32
    %6 = vector.broadcast %cst_5 : f32 to vector<8x32xf32>
    %7 = arith.mulf %5, %6 : vector<8x32xf32>
    %cst_6 = arith.constant 1.000000e+00 : f32
    %8 = vector.broadcast %cst_6 : f32 to vector<8x32xf32>
    %9 = arith.mulf %0, %8 : vector<8x32xf32>
    %10 = arith.addf %7, %9 : vector<8x32xf32>
    %c0_7 = arith.constant 0 : index
    %c0_8 = arith.constant 0 : index
    %11 = vector.load %arg4[%c0_7, %c0_8] : memref<8x32xf32, #tpu.memory_space<vmem>>, vector<8x32xf32>
    tpu.vector_store %arg4[%c0_7, %c0_8], %10 {strides = array<i32>} : memref<8x32xf32, #tpu.memory_space<vmem>>, vector<8x32xf32>,
    return
  }
  func.func @transform_0(%arg0: i32) -> (i32, i32) {
    %c0_i32 = arith.constant 0 : i32
    %c0_i32_0 = arith.constant 0 : i32
    return %arg0, %c0_i32 : i32, i32
  }
  func.func @transform_1(%arg0: i32) -> (i32, i32) {
    %c0_i32 = arith.constant 0 : i32
    %c0_i32_0 = arith.constant 0 : i32
    %c0_i32_1 = arith.constant 0 : i32
    return %c0_i32, %c0_i32_0 : i32, i32
  }
  func.func @transform_2(%arg0: i32) -> (i32, i32) {
    %c0_i32 = arith.constant 0 : i32
    %c0_i32_0 = arith.constant 0 : i32
    %c0_i32_1 = arith.constant 0 : i32
    return %c0_i32, %c0_i32_0 : i32, i32
  }
  func.func @transform_3(%arg0: i32) -> (i32, i32) {
    %c0_i32 = arith.constant 0 : i32
    %c0_i32_0 = arith.constant 0 : i32
    return %arg0, %c0_i32 : i32, i32
  }
}

</mosaic_0001>

<bundles_post_ra>
// kernel: tpu_custom_call.1
= control target key start
LH: loop header
LB: loop body
LE: loop exit
PB: predicated region body
PF: predicated region fallthrough
CT: control target
= control target key end

     0   :  { %8 = vsyncpa [#allocation3], 0  ;;  %s789_s0 = inlined_call_operand.hbm [shape: f32[16,32], index: 0, kind: input, shape index: {}]   ;;  %s790_s1 = inlined_call_operand.hbm [shape: f32[32,32], index: 1, kind: input, shape index: {}]   ;;  %s791_s2 = inlined_call_operand.vmem [shape: f32[1,32], index: 2, kind: input, shape index: {}]   ;;  %s792_s3 = inlined_call_operand.hbm [shape: f32[16,32], index: 3, kind: output, shape index: {}]  }
   0x1   :  { %10 = vsyncpa [#allocation3 + $0x1], 0 }
   0x2   :  { %11 = vsyncpa [#allocation6], 0 }
   0x3   :  { %12 = vsyncpa [#allocation4], 0 }
   0x4   :  { %14 = vsyncpa [#allocation4 + $0x1], 0  ;;  %s628_s12 = smov 0   ;;  %s630_s13 = smov 0  }
   0x5   :  { %s632_s14 = smov 0   ;;  %s634_s15 = smov 0  }
   0x6 LB: > { %s649_s16 = sadd.s32 4294967295, %s599_s15   ;;  %s384_s17 = sadd.s32 4294967294, %s599_s15   ;;  %s599_s15 = sphi %s634_s15, %s814_s15   ;;  %s595_s14 = sphi %s632_s14, %s813_s14   ;;  %s591_s13 = sphi %s630_s13, %s812_s13   ;;  %s587_s12 = sphi %s628_s12, %s811_s12  }
   0x7   : > { %p40_p0 = scmp.ne.s32.totalorder %s591_s13, %s587_s12  ;;  %p793_p1 = scmp.eq.s32.totalorder %s649_s16, 0 }
   0x8   : > { %p112_p3 = scmp.eq.s32.totalorder %s384_s17, 1  ;;  %p385_p5 = scmp.ge.s32.totalorder %s599_s15, 1 }
   0x9   : > { %p658_p4 = por %p793_p1, %p40_p0  ;;  %p119_p7 = scmp.lt.s32.totalorder %s599_s15, 3 }
   0xa   : > { %p663_p6 = por %p112_p3, %p40_p0  ;;  %s601_s21 = smov [#allocation5]  }
   0xb   : > { %s797_s18 = scalar_select %p658_p4, 1, 0 }
   0xc   : > { %s798_s19 = scalar_select %p663_p6, 1, 0 }
   0xd   : > { %p668_p8 = pnand %p385_p5, %p119_p7  ;;  %s131_s22 = sshll.u32 %s601_s21, 4  ;;  %s132_s22 = int_to_ptr.vmem [resolvable:$true] %s131_s22 }
   0xe   : > { %s682_s24 = sadd.s32 1, %s599_s15   ;;  %s27_s25 = sadd.s32 1, %s595_s14 }
   0xf   : > { %s799_s20 = scalar_select %p668_p8, 1, 0 }
  0x10   : > { %p424_p9 = pneg %p668_p8  ;;  %s24_s26 = ssub.s32 %s599_s15, %s682_s24 }
  0x11   : > { %s488_s27 = scalar_lea.vmem %s132_s22, 512  ;;  %p496_p5 = scmp.lt.s32.totalorder %s132_s22, %s132_s22 }
  0x12   : > { %p677_p11 = pnand %p424_p9, %p793_p1  ;;  %p489_p13 = scmp.ne.s32.totalorder %s132_s22, %s488_s27 }
  0x13   : > { %p497_p7 = scmp.lt.s32.totalorder %s488_s27, %s488_s27 }
  0x14   : > { %p479_p12 = pneg %p677_p11 }
  0x15   : > { %p498_p10 = por %p497_p7, %p496_p5 }
  0x16   : > { %p491_p0 = pnand %p489_p13, %p479_p12 }
  0x18   : > { %p492_p3 = pneg %p491_p0 }
  0x1a   : > { %p499_p2 = pnand %p498_p10, %p492_p3 }
  0x1c   : > { %502 = shalt.err (!%p499_p2)
}
  0x1d   : > { %s602_s28 = smov 128   ;;  %s603_s29 = smov 8  }
  0x1e   : > { %427 = dma.hbm_to_vmem [thread:$0]  (!%p677_p11), %s790_s1, 512, %s132_s22, [#allocation6], %s602_s28, %s602_s28, %s603_s29  }
  0x1f   : > { %p25_p9 = scmp.eq.s32.totalorder %s24_s26, 0  ;;  %p34_p12 = scmp.ne.s32.totalorder %s595_s14, %s591_s13 }
  0x20   : > { %p35_p10 = scmp.eq.s32.totalorder %s599_s15, 0  ;;  %p437_p2 = scmp.lt.s32.totalorder %s599_s15, 2 }
  0x21   : > { %s699_s5 = scalar_select %p25_p9, %s595_s14, %s27_s25  }
  0x22   : > { %p36_p13 = por %p35_p10, %p34_p12  ;;  %p801_p0 = scmp.eq.s32.totalorder %s649_s16, 1 }
  0x23   : > { %s148_s7 = sand.u32 1, %s595_s14   ;;  %s389_s8 = sshll.u32 %s599_s15, 7 }
  0x24   : > { %p703_p3 = por %p801_p0, %p34_p12  ;;  %s388_s9 = sshll.u32 %s148_s7, 3 }
  0x25   : > { %s712_s17 = scalar_lea.hbm %s789_s0, %s389_s8  ;;  %s152_s21 = scalar_lea.vmem [#allocation2], %s388_s9 }
  0x26   : > { %s802_s6 = scalar_select %p703_p3, 1, 0 }
  0x27   : > { %s159_s22 = sshll.u32 %s152_s21, 4  ;;  %p714_p11 = pnand %p437_p2, %p36_p13  ;;  %s160_s22 = int_to_ptr.vmem [resolvable:$true] %s159_s22 }
  0x28   : > { %s149_s25 = scalar_lea.sflag [#allocation3], %s148_s7  ;;  %s503_s26 = scalar_lea.hbm %s712_s17, 128 }
  0x29   : > { %p504_p5 = scmp.ne.s32.totalorder %s712_s17, %s503_s26  ;;  %p505_p7 = pneg %p714_p11 }
  0x2a   : > { %s508_s29 = scalar_lea.hbm %s789_s0, 256  ;;  %p509_p10 = scmp.lt.s32.totalorder %s712_s17, %s789_s0 }
  0x2b   : > { %p506_p9 = pnand %p505_p7, %p504_p5  ;;  %p510_p2 = scmp.lt.s32.totalorder %s508_s29, %s503_s26 }
  0x2d   : > { %p507_p12 = pneg %p506_p9  ;;  %p511_p13 = por %p510_p2, %p509_p10 }
  0x2f   : > { %p512_p0 = pnand %p511_p13, %p507_p12 }
  0x31   : > { %515 = shalt.err (!%p512_p0)
}
  0x32   : > { %s516_s8 = scalar_lea.vmem %s160_s22, 128  ;;  %s604_s7 = smov [#allocation2]  }
  0x33   : > { %p517_p1 = scmp.ne.s32.totalorder %s160_s22, %s516_s8  ;;  %s521_s9 = sshll.u32 %s604_s7, 4  ;;  %s522_s9 = int_to_ptr.vmem [resolvable:$false] %s521_s9 }
  0x34   : > { %s523_s10 = scalar_lea.vmem %s522_s9, 256  ;;  %p524_p5 = scmp.lt.s32.totalorder %s160_s22, %s522_s9 }
  0x35   : > { %p519_p6 = pnand %p517_p1, %p505_p7  ;;  %p525_p9 = scmp.lt.s32.totalorder %s523_s10, %s516_s8 }
  0x37   : > { %p520_p3 = pneg %p519_p6  ;;  %p526_p4 = por %p525_p9, %p524_p5 }
  0x39   : > { %p527_p8 = pnand %p526_p4, %p520_p3 }
  0x3b   : > { %530 = shalt.err (!%p527_p8)
}
  0x3c   : > { %431 = dma.hbm_to_vmem [thread:$0]  (!%p714_p11), %s712_s17, 128, %s160_s22, %s149_s25  }
  0x3d   : > { %p804_p12 = scmp.ne.s32.totalorder %s799_s20, 0 }
  0x3e   : > { %s735_s11 = sand.u32 (!%p804_p12), 1, %s591_s13   ;;  %p805_p1 = scmp.ne.s32.totalorder (!%p804_p12), %s797_s18, 0 }
  0x3f   : > { %168 = sbr.rel (%p804_p12) target bundleno = 293 (0x125), region = 32  ;;  %s391_s21 = sshll.u32 (!%p804_p12), %s735_s11, 3 }
  0x40   : > { %s171_s26 = scalar_lea.sflag (!%p804_p12), [#allocation3], %s735_s11  ;;  %s174_s27 = scalar_lea.vmem (!%p804_p12), [#allocation2], %s391_s21 }
  0x44   : > { %574 = dma.done.wait (%p805_p1), %s171_s26, 128  }
  0x45   : > { %576 = vsyncadd (%p805_p1), %s171_s26, 4294967168  ;;  %p806_p4 = scmp.eq.s32.totalorder %s649_s16, 0 }
  0x47   : > { %578 = dma.done.wait (%p806_p4), [#allocation6], 512   ;;  %p807_p6 = pmov %p806_p4 }
  0x48   : > { %v605_v0 = vmov 0.0   ;;  %vm606_vm0 = vmmov 0   ;;  %v205_v1 = vld [vmem:[#allocation5 + $0x18] sm:$0xff]  ;;  %v204_v2 = vld [vmem:[#allocation5 + $0x10] sm:$0xff]  ;;  %v203_v3 = vld [vmem:[#allocation5 + $0x8] sm:$0xff]  ;;  %vm213_vm1 = vcmask 261120  }
  0x49   : > { %580 = vsyncadd (%p807_p6), [#allocation6], 4294966784  ;;  %405 = vmatprep.subr.mxu0 %v605_v0  ;;  %413 = vmatprep.mubr.msk.f32.mxu0 %vm606_vm0, %v605_v0  ;;  %v202_v4 = vld [vmem:[#allocation5] sm:$0xff]  ;;  %v201_v5 = vld [vmem:[%s174_s27] sm:$0xff]  ;;  %s397_s17 = sshll.u32 %s649_s16, 7  ;;  %s200_s22 = scalar_lea.vmem [#allocation7], %s391_s21 }
  0x4a   : > { %406 = vmatpush3.msra.mxu0 %v205_v1  ;;  %v394_v6 = vld [vmem:[%s791_s2] ss:$0 sm:$0xff]  ;;  %s304_s23 = sshll.u32 %s200_s22, 4  ;;  %s302_s29 = scalar_lea.hbm %s792_s3, %s397_s17  ;;  %s305_s23 = int_to_ptr.vmem [resolvable:$true] %s304_s23 }
  0x4b   : > { %407 = vmatprep.subr.mxu0 %v605_v0  ;;  %s291_s30 = scalar_lea.sflag [#allocation4], %s735_s11  ;;  %s531_s4 = scalar_lea.vmem %s305_s23, 128 }
  0x4c   : > { %408 = vmatpush3.msra.mxu0 %v204_v2  ;;  %p532_p8 = scmp.ne.s32.totalorder %s305_s23, %s531_s4  ;;  %p808_p3 = scmp.ne.s32.totalorder %s802_s6, 0 }
  0x4d   : > { %409 = vmatprep.subr.mxu0 %v605_v0  ;;  %s607_s8 = smov [#allocation7]  }
  0x4e   : > { %410 = vmatpush3.msra.mxu0 %v203_v3  ;;  %p533_p11 = pnand %p532_p8, %p808_p3  ;;  %s535_s7 = sshll.u32 %s607_s8, 4  ;;  %s536_s7 = int_to_ptr.vmem [resolvable:$false] %s535_s7 }
  0x4f   : > { %411 = vmatprep.subr.mxu0 %v605_v0  ;;  %s537_s16 = scalar_lea.vmem %s536_s7, 256  ;;  %p538_p10 = scmp.lt.s32.totalorder %s305_s23, %s536_s7 }
  0x50   : > { %412 = vmatpush3.msra.mxu0 %v202_v4  ;;  %p534_p7 = pneg %p533_p11  ;;  %p539_p2 = scmp.lt.s32.totalorder %s537_s16, %s531_s4 }
  0x51   : > { %414 = vmatmul.mubr.msk.f32.vlgmr.msra.gmra.mxu0 %vm213_vm1, %v201_v5 }
  0x52   : > { %p540_p13 = por %p539_p2, %p538_p10 }
  0x54   : > { %p541_p0 = pnand %p540_p13, %p534_p7 }
 0x111   : > { %v283_v7 = vpop.f32.mrf.mxu0 }
 0x112   : > { %v284_v8 = vadd.f32 %v394_v6, %v283_v7 }
 0x113   : > { %v415_v9 = vpop.f32.mrf.mxu0 }
 0x114   : > { %v287_v10 = vmul.f32 0.5, %v284_v8 }
 0x116   : > { %v288_v11 = vadd.f32 %v287_v10, %v201_v5 }
 0x118   : > { %289 = vst.msk [vmem:[%s200_s22] sm:$0xff] %vm213_vm1, %v288_v11 }
 0x119   : > { %544 = shalt.err (!%p541_p0)
}
 0x11a   : > { %s545_s9 = scalar_lea.hbm %s302_s29, 128  ;;  %s549_s21 = scalar_lea.hbm %s792_s3, 256 }
 0x11b   : > { %p546_p5 = scmp.ne.s32.totalorder %s302_s29, %s545_s9  ;;  %p550_p1 = scmp.lt.s32.totalorder %s302_s29, %s792_s3 }
 0x11c   : > { %p551_p4 = scmp.lt.s32.totalorder %s549_s21, %s545_s9 }
 0x11d   : > { %p547_p9 = pnand %p546_p5, %p808_p3 }
 0x11e   : > { %p552_p6 = por %p551_p4, %p550_p1 }
 0x11f   : > { %p548_p12 = pneg %p547_p9 }
 0x121   : > { %p553_p8 = pnand %p552_p6, %p548_p12 }
 0x123   : > { %556 = shalt.err (!%p553_p8)
}
 0x124   : > { %422 = dma.vmem_to_hbm [thread:$0]  (%p808_p3), %s305_s23, 128, %s302_s29, %s291_s30  }
 0x125 PF: > { %s316_s18 = sand.u32 1, %s587_s12   ;;  %p809_p11 = scmp.ne.s32.totalorder %s798_s19, 0 }
 0x126   : > { %p810_p7 = scmp.ge.s32.totalorder %s599_s15, 2  ;;  %s317_s20 = scalar_lea.sflag [#allocation4], %s316_s18 }
 0x128   : > { %p433_p10 = pnand %p810_p7, %p809_p11 }
 0x12a   : > { %p434_p2 = pneg %p433_p10 }
 0x12c   : > { %582 = dma.done.wait (%p434_p2), %s317_s20, 128  }
 0x12d   : > { %584 = vsyncadd (%p434_p2), %s317_s20, 4294967168  ;;  %p17_p13 = scmp.ge.s32.totalorder %s682_s24, 4   ;;  %s811_s12 = smov %s591_s13 }
 0x12e   : > { %s812_s13 = smov %s595_s14  ;;  %s813_s14 = smov %s699_s5 }
 0x12f   : > { %s814_s15 = smov %s682_s24  ;;  %19 = sbr.rel (!%p17_p13) target bundleno = 6 (0x6), region = 81 }
 0x134   :  { %322 = vsyncpa [#allocation3], 1 }
 0x135   :  { %324 = vsyncpa [#allocation3 + $0x1], 1 }
 0x136   :  { %325 = vsyncpa [#allocation6], 1 }
 0x137   :  { %326 = vsyncpa [#allocation4], 1 }
 0x138   :  { %328 = vsyncpa [#allocation4 + $0x1], 1 }

</bundles_post_ra>
